<compile_context>
chip_gen: v7x
topology: tpu7x:2x2x1
jax: 0.10.0
libtpu: 0.0.40
codegen_flags: <defaults>
</compile_context>

<pallas_src>
import math
import functools

import jax
import jax.numpy as jnp
from jax.experimental import pallas as pl
from jax.experimental.pallas import tpu as pltpu


# Finite "-inf": masked weights underflow to exactly 0 and no NaN can appear
# (fully-masked rows return a uniform average instead of the reference's NaN).
MASK_VALUE = -1e30


def _round_up(x, m):
    return ((x + m - 1) // m) * m


def _tile(n, target, prefer_multi=False):
    """Tile size (multiple of 8, <= ~target) minimizing padding.

    Returns (tile, padded_n) with padded_n a multiple of tile."""
    t = min(target, _round_up(n, 8))
    nb = -(-n // t)
    if prefer_multi and nb < 2 and n > 8:
        nb = 2  # >= 2 grid steps along the "parallel" axis for v7x's 2 TCs
    t = _round_up(-(-n // nb), 8)
    return t, nb * t


@functools.lru_cache(maxsize=None)
def _vmem_cap_bytes():
    # Generation-aware ceiling (128 MiB v5e/v6e, 64 MiB v7x) with headroom.
    try:
        cap = getattr(pltpu.get_tpu_info(), "vmem_capacity_bytes", None)
        if cap:
            return int(cap * 0.85)
    except Exception:
        pass
    return 64 * 1024 * 1024


def _vmem_limit(nbytes):
    return int(min(max(2 * nbytes, 32 * 1024 * 1024), _vmem_cap_bytes()))


# ---------------------------------------------------------------------------
# Stacked linear:  out[p] = x @ w[p] + b[p]   (p = projection index)
#   Grid (P, row-blocks): each step holds only one projection's (K, N) weight
#   block in VMEM (v7x-safe), rows tiled "parallel" for megacore sharding.
#   bf16 operands, f32 accumulation, f32 bias, cast on store.
# ---------------------------------------------------------------------------
def _stacked_linear_kernel(x_ref, w_ref, b_ref, o_ref):
    acc = jnp.dot(x_ref[...], w_ref[0], preferred_element_type=jnp.float32)
    o_ref[0] = (acc + b_ref[0]).astype(o_ref.dtype)


def pallas_stacked_linear(x, w, b, *, out_dtype=None):
    """x: (M, K); w: (P, K, N); b: (P, 1, N) f32.  Returns (P, M, N)."""
    M, K = x.shape
    P, _, N = w.shape
    out_dtype = out_dtype if out_dtype is not None else x.dtype

    tm, Mp = _tile(M, 512, prefer_multi=True)
    if Mp != M:
        x = jnp.pad(x, ((0, Mp - M), (0, 0)))

    bytes_needed = (2 * tm * K * x.dtype.itemsize
                    + 2 * K * N * w.dtype.itemsize
                    + 2 * N * 4
                    + 2 * tm * N * jnp.dtype(out_dtype).itemsize)

    out = pl.pallas_call(
        _stacked_linear_kernel,
        out_shape=jax.ShapeDtypeStruct((P, Mp, N), out_dtype),
        grid_spec=pltpu.PrefetchScalarGridSpec(
            num_scalar_prefetch=0,
            grid=(P, Mp // tm),
            in_specs=[
                pl.BlockSpec((tm, K), lambda p, i: (i, 0)),
                pl.BlockSpec((1, K, N), lambda p, i: (p, 0, 0)),
                pl.BlockSpec((1, 1, N), lambda p, i: (p, 0, 0)),
            ],
            out_specs=pl.BlockSpec((1, tm, N), lambda p, i: (p, i, 0)),
        ),
        compiler_params=pltpu.CompilerParams(
            dimension_semantics=("parallel", "parallel"),
            vmem_limit_bytes=_vmem_limit(bytes_needed)),
        cost_estimate=pl.CostEstimate(
            flops=int(2 * P * Mp * K * N),
            transcendentals=0,
            bytes_accessed=int(P * Mp * K * x.dtype.itemsize
                               + P * K * N * w.dtype.itemsize
                               + P * N * 4
                               + P * Mp * N * jnp.dtype(out_dtype).itemsize)),
    )(x, w, b)
    if Mp != M:
        out = out[:, :M, :]
    return out


# ---------------------------------------------------------------------------
# Flash-style masked attention core (online softmax).
#   grid = (batch, q-blocks, k-blocks); k axis is the reduction ("arbitrary").
#   q/k/v are column-sliced per head out of the projection slab inside the
#   kernel; scores / softmax / accumulation in f32; mask built in-kernel from
#   the int32 key mask block (no f32 bias materialization).
# ---------------------------------------------------------------------------
def _flash_mha_kernel(q_ref, k_ref, v_ref, mask_ref, o_ref,
                      m_sc, l_sc, acc_sc, *, n_heads):
    ki = pl.program_id(2)
    dim = q_ref.shape[-1]
    dph = dim // n_heads

    @pl.when(ki == 0)
    def _():
        m_sc[...] = jnp.full(m_sc.shape, -jnp.inf, m_sc.dtype)
        l_sc[...] = jnp.zeros(l_sc.shape, l_sc.dtype)
        acc_sc[...] = jnp.zeros(acc_sc.shape, acc_sc.dtype)

    # Additive mask bias for this (q, k) block; shared across all heads.
    bias = jnp.where(mask_ref[0] != 0, 0.0, MASK_VALUE).astype(jnp.float32)

    q = q_ref[0, 0]          # (TQ, dim)  (q already scaled by 1/sqrt(dph))
    k = k_ref[0, 0]          # (TK, dim)
    v = v_ref[0, 0]          # (TK, dim)

    for h in range(n_heads):
        lo, hi = h * dph, (h + 1) * dph
        s = jax.lax.dot_general(q[:, lo:hi], k[:, lo:hi],
                                (((1,), (1,)), ((), ())),
                                preferred_element_type=jnp.float32)
        s = s + bias                                        # (TQ, TK)
        m_prev = m_sc[h]                                    # (TQ, 1)
        m_new = jnp.maximum(m_prev, s.max(axis=-1, keepdims=True))
        alpha = jnp.exp(m_prev - m_new)
        p = jnp.exp(s - m_new)
        l_sc[h] = alpha * l_sc[h] + p.sum(axis=-1, keepdims=True)
        acc_sc[h] = alpha * acc_sc[h] + jnp.dot(
            p.astype(v.dtype), v[:, lo:hi], preferred_element_type=jnp.float32)
        m_sc[h] = m_new

    @pl.when(ki == pl.num_programs(2) - 1)
    def _():
        # TODO(synk): training-mode attention dropout (pltpu.prng_*) would go
        # here; eval mode is identity.
        outs = [acc_sc[h] * pl.reciprocal(l_sc[h], approx=True)
                for h in range(n_heads)]
        o_ref[0] = jnp.concatenate(outs, axis=-1).astype(o_ref.dtype)


def pallas_flash_mha(q_arr, kv_arr, mask3, n_heads, *, k_idx, v_idx, out_dtype):
    """q_arr: (Pq, bs, qlen, dim) (q at slab index 0); kv_arr: (Pk, bs, klen, dim).
    mask3: (bs, 1, klen) or (bs, qlen, klen) int32, 0 = masked.
    Returns (bs, qlen, dim)."""
    _, bs, qlen, dim = q_arr.shape
    klen = kv_arr.shape[2]
    dph = dim // n_heads
    self_attn = q_arr is kv_arr

    # q tiles: any multiple of 8 up to 256 that divides the padded length.
    TQ, qlen_p = _tile(qlen, 256)
    # k tiles must keep the mask's last block dim lane-legal (full or 128-mult).
    if klen <= 128:
        TK = _round_up(klen, 8)
        klen_p = TK
    else:
        TK = 128
        klen_p = _round_up(klen, 128)

    if self_attn:
        seq_p = max(qlen_p, klen_p)
        if seq_p != qlen:
            q_arr = jnp.pad(q_arr, ((0, 0), (0, 0), (0, seq_p - qlen), (0, 0)))
        kv_arr = q_arr
    else:
        if qlen_p != qlen:
            q_arr = jnp.pad(q_arr, ((0, 0), (0, 0), (0, qlen_p - qlen), (0, 0)))
        if klen_p != klen:
            kv_arr = jnp.pad(kv_arr, ((0, 0), (0, 0), (0, klen_p - klen), (0, 0)))

    mq = mask3.shape[1]                   # 1 (padding mask) or qlen (full mask)
    pad_q = (0, 0) if mq == 1 else (0, qlen_p - qlen)
    if pad_q != (0, 0) or klen_p != klen:
        mask3 = jnp.pad(mask3, ((0, 0), pad_q, (0, klen_p - klen)))
    MQB = 1 if mq == 1 else TQ

    if mq == 1:
        mask_spec = pl.BlockSpec((1, 1, TK), lambda b, qi, ki: (b, 0, ki))
    else:
        mask_spec = pl.BlockSpec((1, TQ, TK), lambda b, qi, ki: (b, qi, ki))

    grid = (bs, qlen_p // TQ, klen_p // TK)
    kernel = functools.partial(_flash_mha_kernel, n_heads=n_heads)

    itm = q_arr.dtype.itemsize
    o_itm = jnp.dtype(out_dtype).itemsize
    bytes_needed = (2 * TQ * dim * itm                   # q tiles (2-buffered)
                    + 4 * TK * dim * itm                 # k + v tiles
                    + 2 * MQB * TK * 4                   # mask tiles
                    + 2 * TQ * dim * o_itm               # output tiles
                    + n_heads * TQ * (dph + 2) * 4)      # f32 scratch

    out = pl.pallas_call(
        kernel,
        out_shape=jax.ShapeDtypeStruct((bs, qlen_p, dim), out_dtype),
        grid_spec=pltpu.PrefetchScalarGridSpec(
            num_scalar_prefetch=0,
            grid=grid,
            in_specs=[
                pl.BlockSpec((1, 1, TQ, dim), lambda b, qi, ki: (0, b, qi, 0)),
                pl.BlockSpec((1, 1, TK, dim),
                             lambda b, qi, ki: (k_idx, b, ki, 0)),
                pl.BlockSpec((1, 1, TK, dim),
                             lambda b, qi, ki: (v_idx, b, ki, 0)),
                mask_spec,
            ],
            out_specs=pl.BlockSpec((1, TQ, dim), lambda b, qi, ki: (b, qi, 0)),
            scratch_shapes=[
                pltpu.VMEM((n_heads, TQ, 1), jnp.float32),    # running max
                pltpu.VMEM((n_heads, TQ, 1), jnp.float32),    # running denom
                pltpu.VMEM((n_heads, TQ, dph), jnp.float32),  # f32 accumulator
            ],
        ),
        compiler_params=pltpu.CompilerParams(
            dimension_semantics=("parallel", "parallel", "arbitrary"),
            vmem_limit_bytes=_vmem_limit(bytes_needed)),
        cost_estimate=pl.CostEstimate(
            flops=int(4 * bs * n_heads * qlen_p * klen_p * dph),
            transcendentals=int(bs * n_heads * qlen_p * klen_p),
            bytes_accessed=int(bs * qlen_p * dim * itm
                               + 2 * bs * klen_p * dim * itm
                               + bs * MQB * klen_p * 4
                               + bs * qlen_p * dim * o_itm)),
    )(q_arr, kv_arr, kv_arr, mask3)

    if qlen_p != qlen:
        out = out[:, :qlen, :]
    return out


# ---------------------------------------------------------------------------
# Parameter prep (done ONCE, outside the forward path):
#   stack / cast projection weights, fold 1/sqrt(dph) into q weights & bias.
# ---------------------------------------------------------------------------
def prepare_mha_params(params, n_heads, compute_dtype=jnp.bfloat16):
    dim = params["wq"].shape[0]
    dph = dim // n_heads
    scale = 1.0 / math.sqrt(dph)
    cd = compute_dtype
    f32 = jnp.float32

    wq_s = params["wq"].astype(f32) * scale
    bq_s = params["bq"].astype(f32) * scale

    return dict(
        n_heads=n_heads,
        compute_dtype=cd,
        # self-attention fused QKV
        w_qkv=jnp.stack([wq_s, params["wk"], params["wv"]]).astype(cd),
        b_qkv=jnp.stack([bq_s, params["bk"], params["bv"]]
                        ).reshape(3, 1, dim).astype(f32),
        # cross-attention (kv != None)
        w_q=wq_s[None].astype(cd),
        b_q=bq_s.reshape(1, 1, dim).astype(f32),
        w_kv=jnp.stack([params["wk"], params["wv"]]).astype(cd),
        b_kv=jnp.stack([params["bk"], params["bv"]]
                       ).reshape(2, 1, dim).astype(f32),
        # output projection
        w_o=params["wo"][None].astype(cd),
        b_o=params["bo"].reshape(1, 1, dim).astype(f32),
    )


# ---------------------------------------------------------------------------
# Full MultiHeadAttention forward (self-attention, or cross-attention via kv).
# ---------------------------------------------------------------------------
def multi_head_attention(x, mask, prep, *, kv=None):
    """x: (bs, qlen, dim); mask: (bs, klen) or (bs, qlen, klen), 0 = masked."""
    bs, qlen, dim = x.shape
    n_heads = prep["n_heads"]
    cd = prep["compute_dtype"]
    out_dtype = x.dtype

    x2 = x.reshape(bs * qlen, dim).astype(cd)

    if kv is None:
        # Fused QKV: (3, bs*qlen, dim) slab; the attention kernel indexes the
        # three projections via BlockSpec leading indices (no split/transpose).
        qkv = pallas_stacked_linear(x2, prep["w_qkv"], prep["b_qkv"],
                                    out_dtype=cd)
        slab = qkv.reshape(3, bs, qlen, dim)
        q_arr, kv_arr, k_idx, v_idx = slab, slab, 1, 2
        klen = qlen
    else:
        klen = kv.shape[1]
        kv2 = kv.reshape(bs * klen, dim).astype(cd)
        q_arr = pallas_stacked_linear(x2, prep["w_q"], prep["b_q"],
                                      out_dtype=cd).reshape(1, bs, qlen, dim)
        kv_arr = pallas_stacked_linear(kv2, prep["w_kv"], prep["b_kv"],
                                       out_dtype=cd).reshape(2, bs, klen, dim)
        k_idx, v_idx = 0, 1
    # TODO(synk): incremental-decoding cache (concat along klen) not implemented;
    # the attention kernel already supports klen != qlen.

    if mask.ndim == 2:
        mask3 = mask.reshape(bs, 1, klen).astype(jnp.int32)
    else:
        mask3 = mask.astype(jnp.int32)

    ctx = pallas_flash_mha(q_arr, kv_arr, mask3, n_heads,
                           k_idx=k_idx, v_idx=v_idx, out_dtype=cd)

    # TODO(synk): the n_langs ModuleList variant selects one of several out_lin
    # weights via segment_label; only the n_langs=None path is implemented.
    out = pallas_stacked_linear(ctx.reshape(bs * qlen, dim),
                                prep["w_o"], prep["b_o"], out_dtype=out_dtype)
    return out.reshape(bs, qlen, dim)


# ---------------------------------------------------------------------------
# Pure-JAX reference mirroring the PyTorch module (f32 everywhere).
# ---------------------------------------------------------------------------
def mha_reference(x, mask, params, n_heads):
    bs, qlen, dim = x.shape
    dph = dim // n_heads
    q = x @ params["wq"] + params["bq"]
    k = x @ params["wk"] + params["bk"]
    v = x @ params["wv"] + params["bv"]

    def shape_(t):
        return t.reshape(bs, -1, n_heads, dph).transpose(0, 2, 1, 3)

    q, k, v = shape_(q), shape_(k), shape_(v)
    q = q / math.sqrt(dph)
    scores = jnp.einsum("bhqd,bhkd->bhqk", q, k)
    if mask.ndim == 2:
        m = (mask == 0).reshape(bs, 1, 1, -1)
    else:
        m = (mask == 0).reshape(bs, 1, qlen, -1)
    scores = jnp.where(m, -jnp.inf, scores)
    weights = jax.nn.softmax(scores.astype(jnp.float32), axis=-1)
    ctx = jnp.einsum("bhqk,bhkd->bhqd", weights, v)
    ctx = ctx.transpose(0, 2, 1, 3).reshape(bs, qlen, dim)
    return ctx @ params["wo"] + params["bo"]


if __name__ == "__main__":
    bs, qlen, dim, n_heads = 2, 8, 32, 4

    key = jax.random.PRNGKey(0)
    keys = jax.random.split(key, 9)
    x = jax.random.normal(keys[0], (bs, qlen, dim), dtype=jnp.float32)

    def init_linear(kw, kb, fan_in, fan_out):
        lim = 1.0 / math.sqrt(fan_in)
        w = jax.random.uniform(kw, (fan_in, fan_out), jnp.float32, -lim, lim)
        b = jax.random.uniform(kb, (fan_out,), jnp.float32, -lim, lim)
        return w, b

    wq, bq = init_linear(keys[1], keys[2], dim, dim)
    wk, bk = init_linear(keys[3], keys[4], dim, dim)
    wv, bv = init_linear(keys[5], keys[6], dim, dim)
    wo, bo = init_linear(keys[7], keys[8], dim, dim)
    params = dict(wq=wq, bq=bq, wk=wk, bk=bk, wv=wv, bv=bv, wo=wo, bo=bo)

    # Padding-style mask: batch 0 attends to all 8 keys, batch 1 only to 5.
    lengths = jnp.array([8, 5])
    mask = (jnp.arange(qlen)[None, :] < lengths[:, None]).astype(jnp.int32)

    prep = prepare_mha_params(params, n_heads)   # once, outside the forward

    out = multi_head_attention(x, mask, prep)
    jax.block_until_ready(out)

    ref = mha_reference(x, mask, params, n_heads)
    assert out.shape == (bs, qlen, dim)
    # bf16 matmul inputs with f32 accumulation -> relaxed tolerance vs f32 ref.
    err = float(jnp.max(jnp.abs(out - ref)))
    assert jnp.allclose(out, ref, atol=5e-2, rtol=5e-2), f"mismatch: {err}"

    print("KERNEL_OK")
</pallas_src>

<mosaic_0001>
module attributes {stable_mosaic.version = 11 : i64} {
  func.func @_stacked_linear_kernel(%arg0: i32, %arg1: i32, %arg2: memref<8x32xbf16, #tpu.memory_space<vmem>>, %arg3: memref<1x32x32xbf16, #tpu.memory_space<vmem>>, %arg4: memref<1x1x32xf32, #tpu.memory_space<vmem>>, %arg5: memref<1x8x32xbf16, #tpu.memory_space<vmem>>) attributes {dimension_semantics = [#tpu.dimension_semantics<parallel>, #tpu.dimension_semantics<parallel>], iteration_bounds = array<i64: 3, 2>, scalar_prefetch = 0 : i64, scratch_operands = 0 : i64, tpu.core_type = #tpu.core_type<tc>, window_params = [{transform_indices = @transform_0, window_bounds = array<i64: 8, 32>}, {transform_indices = @transform_1, window_bounds = array<i64: 1, 32, 32>}, {transform_indices = @transform_2, window_bounds = array<i64: 1, 1, 32>}, {transform_indices = @transform_3, window_bounds = array<i64: 1, 8, 32>}]} {
    %c0 = arith.constant 0 : index
    %c0_0 = arith.constant 0 : index
    %0 = vector.load %arg2[%c0, %c0_0] : memref<8x32xbf16, #tpu.memory_space<vmem>>, vector<8x32xbf16>
    %c0_1 = arith.constant 0 : index
    %c0_2 = arith.constant 0 : index
    %c0_3 = arith.constant 0 : index
    %1 = vector.load %arg3[%c0_1, %c0_2, %c0_3] : memref<1x32x32xbf16, #tpu.memory_space<vmem>>, vector<1x32x32xbf16>
    %2 = vector.shape_cast %1 : vector<1x32x32xbf16> to vector<32x32xbf16>
    %cst = arith.constant dense<0.000000e+00> : vector<8x32xf32>
    %3 = tpu.matmul %0, %2, %cst {dimension_numbers = #tpu.dot_dimension_numbers<[1], [0], [0], [1], [0, 0, 1, 1], [], []>} : vector<8x32xbf16>, vector<32x32xbf16>, vector<8x32xf32> -> vector<8x32xf32>
    %c0_4 = arith.constant 0 : index
    %c0_5 = arith.constant 0 : index
    %c0_6 = arith.constant 0 : index
    %4 = vector.load %arg4[%c0_4, %c0_5, %c0_6] : memref<1x1x32xf32, #tpu.memory_space<vmem>>, vector<1x1x32xf32>
    %5 = vector.shape_cast %4 : vector<1x1x32xf32> to vector<1x32xf32>
    %6 = vector.broadcast %5 : vector<1x32xf32> to vector<8x32xf32>
    %7 = arith.addf %3, %6 : vector<8x32xf32>
    %8 = arith.truncf %7 : vector<8x32xf32> to vector<8x32xbf16>
    %c0_7 = arith.constant 0 : index
    %c0_8 = arith.constant 0 : index
    %c0_9 = arith.constant 0 : index
    %9 = vector.load %arg5[%c0_7, %c0_8, %c0_9] : memref<1x8x32xbf16, #tpu.memory_space<vmem>>, vector<1x8x32xbf16>
    %10 = vector.shape_cast %9 : vector<1x8x32xbf16> to vector<8x32xbf16>
    %11 = vector.shape_cast %8 : vector<8x32xbf16> to vector<1x8x32xbf16>
    tpu.vector_store %arg5[%c0_7, %c0_8, %c0_9], %11 {strides = array<i32>} : memref<1x8x32xbf16, #tpu.memory_space<vmem>>, vector<1x8x32xbf16>,
    return
  }
  func.func @transform_0(%arg0: i32, %arg1: i32) -> (i32, i32) {
    %c0_i32 = arith.constant 0 : i32
    %c0_i32_0 = arith.constant 0 : i32
    return %arg1, %c0_i32 : i32, i32
  }
  func.func @transform_1(%arg0: i32, %arg1: i32) -> (i32, i32, i32) {
    %c0_i32 = arith.constant 0 : i32
    %c0_i32_0 = arith.constant 0 : i32
    %c0_i32_1 = arith.constant 0 : i32
    return %arg0, %c0_i32, %c0_i32_0 : i32, i32, i32
  }
  func.func @transform_2(%arg0: i32, %arg1: i32) -> (i32, i32, i32) {
    %c0_i32 = arith.constant 0 : i32
    %c0_i32_0 = arith.constant 0 : i32
    %c0_i32_1 = arith.constant 0 : i32
    return %arg0, %c0_i32, %c0_i32_0 : i32, i32, i32
  }
  func.func @transform_3(%arg0: i32, %arg1: i32) -> (i32, i32, i32) {
    %c0_i32 = arith.constant 0 : i32
    %c0_i32_0 = arith.constant 0 : i32
    return %arg0, %arg1, %c0_i32 : i32, i32, i32
  }
}

</mosaic_0001>

<bundles_post_ra>
// kernel: tpu_custom_call.1
= control target key start
LH: loop header
LB: loop body
LE: loop exit
PB: predicated region body
PF: predicated region fallthrough
CT: control target
= control target key end

     0   :  { %s1200_s0 = inlined_call_operand.hbm [shape: bf16[16,32], index: 0, kind: input, shape index: {}]   ;;  %s1201_s1 = inlined_call_operand.hbm [shape: bf16[3,32,32], index: 1, kind: input, shape index: {}]   ;;  %s1202_s2 = inlined_call_operand.vmem [shape: f32[3,1,32], index: 2, kind: input, shape index: {}]   ;;  %s1203_s3 = inlined_call_operand.hbm [shape: bf16[3,16,32], index: 3, kind: output, shape index: {}]  }
   0x1   :  { %1211 = sst [smem:[#allocation18_spill]] %s1200_s0 }
   0x2   :  { %8 = vsyncpa [#allocation3], 0 }
   0x3   :  { %10 = vsyncpa [#allocation3 + $0x1], 0 }
   0x4   :  { %11 = vsyncpa [#allocation6], 0 }
   0x5   :  { %13 = vsyncpa [#allocation6 + $0x1], 0 }
   0x6   :  { %14 = vsyncpa [#allocation4], 0 }
   0x7   :  { %16 = vsyncpa [#allocation4 + $0x1], 0  ;;  %s867_s12 = smov 0   ;;  %s869_s13 = smov 0  }
   0x8   :  { %s871_s14 = smov 0   ;;  %s873_s15 = smov 0  }
   0x9   :  { %s875_s16 = smov 0   ;;  %s877_s17 = smov 0  }
   0xa   :  { %s879_s18 = smov 0   ;;  %s881_s19 = smov 0  }
   0xb   :  { %s883_s20 = smov 0   ;;  %s885_s21 = smov 0  }
   0xc   :  { %s887_s22 = smov 0   ;;  %s889_s23 = smov 0  }
   0xd   :  { %s891_s24 = smov 0   ;;  %s893_s25 = smov 0  }
   0xe LB: > { %1212 = sst [smem:[#allocation11_spill]] %s830_s23  ;;  %s457_s26 = sadd.s32 4294967295, %s838_s25   ;;  %s838_s25 = sphi %s893_s25, %s22_s25   ;;  %s834_s24 = sphi %s891_s24, %s1243_s24   ;;  %s830_s23 = sphi %s889_s23, %s1242_s23   ;;  %s826_s22 = sphi %s887_s22, %s1241_s22   ;;  %s822_s21 = sphi %s885_s21, %s1240_s21   ;;  %s818_s20 = sphi %s883_s20, %s1252_s20   ;;  %s814_s19 = sphi %s881_s19, %s1251_s19   ;;  %s810_s18 = sphi %s879_s18, %s1250_s18   ;;  %s806_s17 = sphi %s877_s17, %s1249_s17   ;;  %s802_s16 = sphi %s875_s16, %s1248_s16   ;;  %s798_s15 = sphi %s873_s15, %s1247_s15   ;;  %s794_s14 = sphi %s871_s14, %s1246_s14   ;;  %s790_s13 = sphi %s869_s13, %s1245_s13   ;;  %s786_s12 = sphi %s867_s12, %s1244_s12  }
   0xf   : > { %1213 = sst [smem:[#allocation12_spill]] %s834_s24  ;;  %s31_s28 = sadd.s32 1, %s830_s23 }
  0x10   : > { %s34_s29 = sadd.s32 1, %s834_s24  ;;  %p32_p0 = scmp.ge.s32.totalorder %s31_s28, 2 }
  0x11   : > { %s41_s30 = sadd.s32 1, %s818_s20  ;;  %p48_p1 = scmp.ne.s32.totalorder %s818_s20, %s814_s19 }
  0x12   : > { %p49_p2 = scmp.eq.s32.totalorder %s838_s25, 0  ;;  %s1254_s28 = smov (%p32_p0, %s31_s28), 0 }
  0x13   : > { %1214 = sst [smem:[#allocation13_spill]] %s1254_s28  ;;  %s1256_s29 = smov (!%p32_p0, %s34_s29), %s834_s24 }
  0x14   : > { %s38_s4 = ssub.s32 %s830_s23, %s1254_s28  ;;  %p950_p3 = por %p49_p2, %p48_p1 }
  0x15   : > { %p36_p4 = scmp.ge.s32.totalorder %s1256_s29, 3  ;;  %p39_p5 = scmp.eq.s32.totalorder %s38_s4, 0 }
  0x16   : > { %p54_p6 = scmp.ne.s32.totalorder %s814_s19, %s810_s18  ;;  %p55_p7 = scmp.eq.s32.totalorder %s457_s26, 0 }
  0x17   : > { %s1258_s29 = smov (%p36_p4, %s1256_s29), 0  ;;  %s67_s9 = sadd.s32 1, %s806_s17 }
  0x18   : > { %1216 = sst [smem:[#allocation14_spill]] %s1258_s29  ;;  %p962_p8 = por %p55_p7, %p54_p6 }
  0x19   : > { %s960_s6 = scalar_select %p39_p5, %s818_s20, %s41_s30  }
  0x1a   : > { %s1218_s7 = scalar_select %p962_p8, 1, 0 }
  0x1b   : > { %1217 = sst [smem:[#allocation15_spill]] %s960_s6  ;;  %s64_s8 = ssub.s32 %s834_s24, %s1258_s29 }
  0x1c   : > { %p65_p9 = scmp.eq.s32.totalorder %s64_s8, 0  ;;  %p74_p10 = scmp.ne.s32.totalorder %s806_s17, %s802_s16 }
  0x1d   : > { %p80_p11 = scmp.ne.s32.totalorder %s802_s16, %s798_s15  ;;  %s118_s30 = sor.u32 %s64_s8, %s38_s4 }
  0x1e   : > { %s974_s10 = scalar_select %p65_p9, %s806_s17, %s67_s9  }
  0x1f   : > { %p978_p12 = por %p74_p10, %p49_p2  ;;  %p982_p13 = por %p80_p11, %p55_p7 }
  0x20   : > { %1219 = sst [smem:[#allocation16_spill]] %s974_s10  ;;  %s121_s27 = sadd.s32 1, %s794_s14 }
  0x21   : > { %s1221_s18 = scalar_select %p982_p13, 1, 0 }
  0x22   : > { %p119_p0 = scmp.eq.s32.totalorder %s118_s30, 0  ;;  %p131_p1 = scmp.ne.s32.totalorder %s794_s14, %s790_s13 }
  0x23   : > { %p132_p4 = scmp.eq.s32.totalorder %s457_s26, 5  ;;  %p137_p5 = scmp.ne.s32.totalorder %s790_s13, %s786_s12 }
  0x24   : > { %s994_s15 = scalar_select %p119_p0, %s794_s14, %s121_s27  }
  0x25   : > { %p996_p2 = por %p132_p4, %p131_p1  ;;  %s1224_s29 = sadd.s32 4294967294, %s838_s25  }
  0x26   : > { %1222 = sst [smem:[#allocation17_spill]] %s994_s15  ;;  %p138_p6 = scmp.eq.s32.totalorder %s1224_s29, 5 }
  0x27   : > { %s1223_s9 = scalar_select %p996_p2, 1, 0 }
  0x28   : > { %p508_p7 = scmp.lt.s32.totalorder %s838_s25, 6  ;;  %p1003_p9 = por %p138_p6, %p137_p5 }
  0x29   : > { %s158_s8 = sand.u32 1, %s818_s20   ;;  %s462_s28 = sshll.u32 %s830_s23, 6 }
  0x2a   : > { %s1225_s4 = scalar_select %p1003_p9, 1, 0 }
  0x2b   : > { %s461_s30 = sshll.u32 %s158_s8, 2  ;;  %s1226_s0 = sld [smem:[#allocation18_spill]] }
  0x2c   : > { %s162_s27 = scalar_lea.vmem [#allocation2], %s461_s30  ;;  %p1018_p10 = pnand %p508_p7, %p950_p3 }
  0x2d   : > { %s169_s15 = sshll.u32 %s162_s27, 4  ;;  %p1024_p11 = pnand %p508_p7, %p978_p12  ;;  %s1014_s15 = int_to_ptr.vmem [resolvable:$true] %s169_s15 }
  0x2e   : > { %p630_p5 = pneg %p1018_p10 }
  0x31   : > { %s1012_s10 = scalar_lea.hbm %s1226_s0, %s462_s28  ;;  %s159_s28 = scalar_lea.sflag [#allocation3], %s158_s8 }
  0x32   : > { %s628_s30 = scalar_lea.hbm %s1012_s10, 64  ;;  %s633_s11 = scalar_lea.hbm %s1226_s0, 128 }
  0x33   : > { %p629_p4 = scmp.ne.s32.totalorder %s1012_s10, %s628_s30  ;;  %p634_p12 = scmp.lt.u32.totalorder %s1012_s10, %s1226_s0 }
  0x34   : > { %p635_p7 = scmp.lt.u32.totalorder %s633_s11, %s628_s30  ;;  %p637_p1 = scmp.lt.u32.totalorder %s628_s30, %s1012_s10 }
  0x35   : > { %p631_p3 = pnand %p630_p5, %p629_p4 }
  0x36   : > { %p636_p0 = por %p635_p7, %p634_p12 }
  0x37   : > { %p632_p6 = pneg %p631_p3 }
  0x38   : > { %p638_p9 = por %p637_p1, %p636_p0 }
  0x3a   : > { %p639_p2 = pnand %p638_p9, %p632_p6 }
  0x3c   : > { %642 = shalt.err (!%p639_p2)
}
  0x3d   : > { %s643_s8 = scalar_lea.vmem %s1014_s15, 64  ;;  %s840_s5 = smov [#allocation2]  }
  0x3e   : > { %p644_p4 = scmp.ne.s32.totalorder %s1014_s15, %s643_s8  ;;  %s648_s26 = sshll.u32 %s840_s5, 4  ;;  %s649_s26 = int_to_ptr.vmem [resolvable:$false] %s648_s26 }
  0x3f   : > { %s650_s23 = scalar_lea.vmem %s649_s26, 128  ;;  %p651_p8 = scmp.lt.s32.totalorder %s1014_s15, %s649_s26 }
  0x40   : > { %p646_p3 = pnand %p644_p4, %p630_p5  ;;  %p652_p12 = scmp.lt.s32.totalorder %s650_s23, %s643_s8 }
  0x42   : > { %p647_p13 = pneg %p646_p3  ;;  %p653_p7 = por %p652_p12, %p651_p8 }
  0x44   : > { %p654_p0 = pnand %p653_p7, %p647_p13 }
  0x46   : > { %657 = shalt.err (!%p654_p0)
}
  0x47   : > { %500 = dma.hbm_to_vmem [thread:$0]  (!%p1018_p10), %s1012_s10, 64, %s1014_s15, %s159_s28  }
  0x48   : > { %p1229_p2 = scmp.lt.s32.totalorder %s838_s25, 7  ;;  %p1230_p9 = scmp.ge.s32.totalorder %s838_s25, 1 }
  0x49   : > { %s176_s11 = sand.u32 1, %s806_s17   ;;  %s479_s27 = sshll.u32 %s834_s24, 8 }
  0x4a   : > { %p1059_p1 = pnand %p1230_p9, %p1229_p2  ;;  %s463_s8 = sshll.u32 %s176_s11, 4 }
  0x4b   : > { %s1068_s26 = scalar_lea.hbm %s1201_s1, %s479_s27  ;;  %s180_s23 = scalar_lea.vmem [#allocation5], %s463_s8 }
  0x4c   : > { %s187_s10 = sshll.u32 %s180_s23, 4  ;;  %s1072_s15 = scalar_lea.sflag [#allocation6], %s176_s11  ;;  %s1070_s10 = int_to_ptr.vmem [resolvable:$true] %s187_s10 }
  0x4d   : > { %s658_s28 = scalar_lea.hbm %s1068_s26, 256  ;;  %p660_p13 = pneg %p1024_p11 }
  0x4e   : > { %p659_p8 = scmp.ne.s32.totalorder %s1068_s26, %s658_s28  ;;  %s663_s29 = scalar_lea.hbm %s1201_s1, 768 }
  0x4f   : > { %p664_p6 = scmp.lt.u32.totalorder %s1068_s26, %s1201_s1  ;;  %p665_p4 = scmp.lt.u32.totalorder %s663_s29, %s658_s28 }
  0x50   : > { %p661_p10 = pnand %p660_p13, %p659_p8  ;;  %p667_p12 = scmp.lt.u32.totalorder %s658_s28, %s1068_s26 }
  0x51   : > { %p666_p3 = por %p665_p4, %p664_p6 }
  0x52   : > { %p662_p5 = pneg %p661_p10 }
  0x53   : > { %p668_p7 = por %p667_p12, %p666_p3 }
  0x55   : > { %p669_p0 = pnand %p668_p7, %p662_p5 }
  0x57   : > { %672 = shalt.err (!%p669_p0)
}
  0x58   : > { %s673_s11 = scalar_lea.vmem %s1070_s10, 256  ;;  %s841_s8 = smov [#allocation5]  }
  0x59   : > { %p674_p2 = scmp.ne.s32.totalorder %s1070_s10, %s673_s11  ;;  %s678_s23 = sshll.u32 %s841_s8, 4  ;;  %s679_s23 = int_to_ptr.vmem [resolvable:$false] %s678_s23 }
  0x5a   : > { %s680_s0 = scalar_lea.vmem %s679_s23, 512  ;;  %p681_p10 = scmp.lt.s32.totalorder %s1070_s10, %s679_s23 }
  0x5b   : > { %p676_p9 = pnand %p674_p2, %p660_p13  ;;  %p682_p6 = scmp.lt.s32.totalorder %s680_s0, %s673_s11 }
  0x5d   : > { %p677_p8 = pneg %p676_p9  ;;  %p683_p4 = por %p682_p6, %p681_p10 }
  0x5f   : > { %p684_p3 = pnand %p683_p4, %p677_p8 }
  0x61   : > { %687 = shalt.err (!%p684_p3)
}
  0x62   : > { %s842_s24 = smov 64   ;;  %s843_s28 = smov 4  }
  0x63   : > { %503 = dma.hbm_to_vmem [thread:$0]  (!%p1024_p11), %s1068_s26, 256, %s1070_s10, %s1072_s15, %s842_s24, %s842_s24, %s843_s28  }
  0x64   : > { %205 = sbr.rel (%p1059_p1) target bundleno = 351 (0x15f), region = 32  ;;  %s207_s27 = sand.u32 (!%p1059_p1), 1, %s814_s19  }
  0x65   : > { %s467_s5 = sshll.u32 (!%p1059_p1), %s207_s27, 2  ;;  %s208_s29 = scalar_lea.sflag (!%p1059_p1), [#allocation3], %s207_s27 }
  0x66   : > { %s211_s11 = scalar_lea.vmem (!%p1059_p1), [#allocation2], %s467_s5  ;;  %p1232_p13 = scmp.ne.s32.totalorder (!%p1059_p1), %s1218_s7, 0 }
  0x6b   : > { %773 = dma.done.wait (%p1232_p13), %s208_s29, 64  }
  0x6c   : > { %775 = vsyncadd (%p1232_p13), %s208_s29, 4294967232  ;;  %s216_s8 = sand.u32 1, %s802_s16   ;;  %p1233_p11 = scmp.ne.s32.totalorder %s1221_s18, 0 }
  0x6d   : > { %s468_s23 = sshll.u32 %s216_s8, 4  ;;  %s217_s6 = scalar_lea.sflag [#allocation6], %s216_s8 }
  0x6e   : > { %s220_s26 = scalar_lea.vmem [#allocation5], %s468_s23 }
  0x6f   : > { %777 = dma.done.wait (%p1233_p11), %s217_s6, 256  }
  0x70   : > { %779 = vsyncadd (%p1233_p11), %s217_s6, 4294967040  ;;  %v844_v0 = vmov 0.0   ;;  %vm845_vm0 = vmmov 0   ;;  %v626_v1 = vld [vmem:[%s220_s26] sm:$0xff]   ;;  %v627_v2 = vld [vmem:[%s220_s26 + $0x8] sm:$0xff]   ;;  %vm279_vm1 = vcmask 261120  }
  0x71   : > { %483 = vmatprep.subr.bf16.mxu0 %v844_v0  ;;  %487 = vmatprep.mubr.msk.bf16.mxu0 %vm845_vm0, %v844_v0  ;;  %v255_v3 = vld [vmem:[%s211_s11] sm:$0xf]  ;;  %p251_p1 = scmp.lt.s32.totalorder %s826_s22, 2  ;;  %s248_s18 = sand.u32 1, %s790_s13   ;;  %vm324_vm2 = vcmask 257024  }
  0x72   : > { %484 = vmatpush3.bf16.msra.mxu0 %v626_v1  ;;  %s469_s30 = sshll.u32 %s248_s18, 2  ;;  %s475_s10 = sshll.u32 %s826_s22, 1 }
  0x73   : > { %485 = vmatprep.subr.bf16.mxu0 %v844_v0  ;;  %s252_s7 = scalar_select %p251_p1, %s826_s22, 2 }
  0x74   : > { %s338_s28 = sadd.s32 %s822_s21, %s475_s10  ;;  %s250_s5 = scalar_lea.vmem [#allocation7], %s469_s30 }
  0x75   : > { %s253_s24 = scalar_lea.vmem %s1202_s2, %s252_s7  ;;  %s476_s27 = sshll.u32 %s338_s28, 6 }
  0x76   : > { %486 = vmatpush3.bf16.msra.mxu0 %v627_v2  ;;  %v470_v4 = vld [vmem:[%s253_s24] ss:$0 sm:$0xff]  ;;  %s342_s29 = sshll.u32 %s250_s5, 4  ;;  %s1123_s22 = scalar_lea.hbm %s1203_s3, %s476_s27  ;;  %s1125_s29 = int_to_ptr.vmem [resolvable:$true] %s342_s29 }
  0x77   : > { %s327_s21 = scalar_lea.sflag [#allocation4], %s248_s18  ;;  %s688_s23 = scalar_lea.vmem %s1125_s29, 64 }
  0x78   : > { %p689_p5 = scmp.ne.s32.totalorder %s1125_s29, %s688_s23  ;;  %p1234_p12 = scmp.ne.s32.totalorder %s1223_s9, 0 }
  0x79   : > { %488 = vmatmul.mubr.msk.bf16.vlgmr.msra.gmra.mrb[0].mxu0 %vm279_vm1, %v255_v3  ;;  %s846_s6 = smov [#allocation7]  }
  0x7a   : > { %p690_p7 = pnand %p689_p5, %p1234_p12  ;;  %s692_s26 = sshll.u32 %s846_s6, 4  ;;  %s693_s26 = int_to_ptr.vmem [resolvable:$false] %s692_s26 }
  0x7b   : > { %s694_s7 = scalar_lea.vmem %s693_s26, 128  ;;  %p695_p2 = scmp.lt.s32.totalorder %s1125_s29, %s693_s26 }
  0x7c   : > { %p691_p0 = pneg %p690_p7  ;;  %p696_p9 = scmp.lt.s32.totalorder %s694_s7, %s688_s23 }
  0x7e   : > { %p697_p8 = por %p696_p9, %p695_p2 }
  0x80   : > { %p698_p10 = pnand %p697_p8, %p691_p0 }
 0x14c   : > { %v317_v5 = vpop.f32.mrb[0].mxu0 }
 0x14d   : > { %v318_v6 = vadd.f32 %v470_v4, %v317_v5  ;;  %v489_v7 = vpop.f32.mrb[1].mxu0 }
 0x14e   : > { %v320_v8 = vpop.f32.mrb[2].mxu0 }
 0x14f   : > { %v323_v9 = vpack.c.bf16 %v318_v6, %v318_v6  ;;  %v490_v10 = vpop.f32.mrb[3].mxu0 }
 0x151   : > { %325 = vst.msk [vmem:[%s250_s5] sm:$0xf] %vm324_vm2, %v323_v9 }
 0x152   : > { %701 = shalt.err (!%p698_p10)
}
 0x153   : > { %s702_s18 = scalar_lea.hbm %s1123_s22, 64  ;;  %s706_s15 = scalar_lea.hbm %s1203_s3, 384 }
 0x154   : > { %p703_p6 = scmp.ne.s32.totalorder %s1123_s22, %s702_s18  ;;  %p707_p13 = scmp.lt.u32.totalorder %s1123_s22, %s1203_s3 }
 0x155   : > { %p708_p11 = scmp.lt.u32.totalorder %s706_s15, %s702_s18  ;;  %p710_p5 = scmp.lt.u32.totalorder %s702_s18, %s1123_s22 }
 0x156   : > { %p704_p4 = pnand %p703_p6, %p1234_p12 }
 0x157   : > { %p709_p1 = por %p708_p11, %p707_p13 }
 0x158   : > { %p705_p3 = pneg %p704_p4 }
 0x159   : > { %p711_p7 = por %p710_p5, %p709_p1 }
 0x15b   : > { %p712_p0 = pnand %p711_p7, %p705_p3 }
 0x15d   : > { %715 = shalt.err (!%p712_p0)
}
 0x15e   : > { %495 = dma.vmem_to_hbm [thread:$0]  (%p1234_p12), %s1125_s29, 64, %s1123_s22, %s327_s21  }
 0x15f PF: > { %p509_p2 = scmp.ge.s32.totalorder %s838_s25, 2  ;;  %s354_s28 = sand.u32 1, %s786_s12  }
 0x160   : > { %p1235_p9 = scmp.ne.s32.totalorder %s1225_s4, 0  ;;  %s355_s27 = scalar_lea.sflag [#allocation4], %s354_s28 }
 0x162   : > { %p505_p8 = pnand %p509_p2, %p1235_p9 }
 0x164   : > { %781 = dma.done.wait (!%p505_p8), %s355_s27, 64  }
 0x165   : > { %783 = vsyncadd (!%p505_p8), %s355_s27, 4294967232  ;;  %s22_s25 = sadd.s32 1, %s838_s25   ;;  %s1237_s9 = sld [smem:[#allocation17_spill]] }
 0x166   : > { %p1153_p10 = scmp.ge.s32.totalorder %s22_s25, 8   ;;  %s1238_s29 = sld [smem:[#allocation16_spill]] }
 0x167   : > { %s1239_s11 = sld [smem:[#allocation15_spill]]  ;;  %s1240_s21 = sld [smem:[#allocation11_spill]] }
 0x168   : > { %s1241_s22 = sld [smem:[#allocation12_spill]]  ;;  %s1242_s23 = sld [smem:[#allocation13_spill]] }
 0x169   : > { %s1243_s24 = sld [smem:[#allocation14_spill]]  ;;  %s1244_s12 = smov %s790_s13 }
 0x16a   : > { %s1245_s13 = smov %s794_s14  ;;  %s1247_s15 = smov %s802_s16 }
 0x16b   : > { %s1246_s14 = smov %s1237_s9  ;;  %s1248_s16 = smov %s806_s17 }
 0x16c   : > { %s1249_s17 = smov %s1238_s29  ;;  %s1250_s18 = smov %s814_s19 }
 0x16d   : > { %s1251_s19 = smov %s818_s20  ;;  %s1252_s20 = smov %s1239_s11 }
 0x16e   :  { %21 = sbr.rel (!%p1153_p10) target bundleno = 14 (0xe), region = 93 }
 0x175   :  { %360 = vsyncpa [#allocation3], 1 }
 0x176   :  { %362 = vsyncpa [#allocation3 + $0x1], 1 }
 0x177   :  { %363 = vsyncpa [#allocation6], 1 }
 0x178   :  { %365 = vsyncpa [#allocation6 + $0x1], 1 }
 0x179   :  { %366 = vsyncpa [#allocation4], 1 }
 0x17a   :  { %368 = vsyncpa [#allocation4 + $0x1], 1 }

</bundles_post_ra>
